<compile_context>
chip_gen: v7x
topology: tpu7x:2x2x1
jax: 0.10.0
libtpu: 0.0.40
codegen_flags: <defaults>
</compile_context>

<pallas_src>
import jax
import jax.numpy as jnp
from jax.experimental import pallas as pl
from jax.experimental.pallas import tpu as pltpu

INPUT_SIZE = 28
HIDDEN = 64
N_CLASSES = 10

# PyTorch gate order [i, f, g, o] -> kernel gate order [i, f, o, g]
_GATE_PERM = (0, 1, 3, 2)


def _lstm_kernel(x_ref, wih_ref, whh_ref, b_ref, wo_ref, bo_ref, out_ref):
    B, T, D = x_ref.shape
    H = HIDDEN

    # ---- Hoisted input projection: one MXU matmul over all timesteps. ----
    # (B, T, D) -> (B*T, D) is a layout-compatible reshape (minor dim kept).
    x2d = x_ref[...].reshape(B * T, D)
    xp = jnp.dot(x2d, wih_ref[...], preferred_element_type=jnp.float32)
    xp = (xp + b_ref[...]).reshape(B, T, 4 * H)          # (B, T, 4H)

    whh = whh_ref[...]                                    # (H, 4H), resident in VMEM
    h = jnp.zeros((B, H), jnp.float32)
    c = jnp.zeros((B, H), jnp.float32)

    # T is a trace-time constant (shape), so this loop fully unrolls; all
    # slices below are static.  For long sequences switch to lax.fori_loop.
    for t in range(T):
        gates = xp[:, t, :] + jnp.dot(h, whh, preferred_element_type=jnp.float32)
        # Gate column order is [i, f, o, g]: sigmoid over one contiguous slab,
        # tanh over the trailing H columns.
        sig = jax.nn.sigmoid(gates[:, : 3 * H])
        g = jnp.tanh(gates[:, 3 * H:])
        i = sig[:, :H]
        f = sig[:, H:2 * H]
        o = sig[:, 2 * H:3 * H]
        c = f * c + i * g
        h = o * jnp.tanh(c)

    logits = jnp.dot(h, wo_ref[...], preferred_element_type=jnp.float32) + bo_ref[...]
    out_ref[...] = logits.astype(out_ref.dtype)           # lane width 10: single masked store, OK


def _permute_gate_rows_w(w):
    """w: (4H, K) in PyTorch gate order -> (4H, K) in [i, f, o, g] order."""
    H = HIDDEN
    blocks = w.reshape(4, H, -1)
    return jnp.concatenate([blocks[p] for p in _GATE_PERM], axis=0)


def _permute_gate_rows_b(b):
    H = HIDDEN
    blocks = b.reshape(4, H)
    return jnp.concatenate([blocks[p] for p in _GATE_PERM], axis=0)


@jax.jit
def rnn_forward(x, w_ih, w_hh, b_ih, b_hh, w_out, b_out):
    """x: (B, T, INPUT_SIZE) float32, batch_first.  Returns (B, N_CLASSES)."""
    B, T, D = x.shape
    H = HIDDEN

    # Prepare transposed / gate-permuted weights (done once under jit; cheap).
    wih_t = jnp.transpose(_permute_gate_rows_w(w_ih), (1, 0))   # (D, 4H)
    whh_t = jnp.transpose(_permute_gate_rows_w(w_hh), (1, 0))   # (H, 4H)
    b = _permute_gate_rows_b(b_ih + b_hh).reshape(1, 4 * H)     # (1, 4H)
    wo_t = jnp.transpose(w_out, (1, 0))                         # (H, 10)
    bo = b_out.reshape(1, N_CLASSES)                            # (1, 10)

    vmem = pltpu.MemorySpace.VMEM
    return pl.pallas_call(
        _lstm_kernel,
        out_shape=jax.ShapeDtypeStruct((B, N_CLASSES), jnp.float32),
        in_specs=[pl.BlockSpec(memory_space=vmem) for _ in range(6)],
        out_specs=pl.BlockSpec(memory_space=vmem),
    )(x, wih_t, whh_t, b, wo_t, bo)
    # TODO(synk): for non-toy batch sizes on v7x, add a batch grid axis marked
    # "parallel" so both TensorCores each run part of the recurrence.


def rnn_forward_ref(x, w_ih, w_hh, b_ih, b_hh, w_out, b_out):
    """Pure-JAX reference mirroring torch.nn.LSTM + Linear on the last step."""
    B, T, D = x.shape
    H = HIDDEN
    h = jnp.zeros((B, H), jnp.float32)
    c = jnp.zeros((B, H), jnp.float32)
    for t in range(T):
        gates = x[:, t, :] @ w_ih.T + h @ w_hh.T + b_ih + b_hh
        i = jax.nn.sigmoid(gates[:, 0 * H:1 * H])
        f = jax.nn.sigmoid(gates[:, 1 * H:2 * H])
        g = jnp.tanh(gates[:, 2 * H:3 * H])
        o = jax.nn.sigmoid(gates[:, 3 * H:4 * H])
        c = f * c + i * g
        h = o * jnp.tanh(c)
    return h @ w_out.T + b_out


def init_params(key):
    """Deterministic init matching PyTorch shapes (uniform(-1/sqrt(H), 1/sqrt(H)))."""
    H = HIDDEN
    k = 1.0 / jnp.sqrt(jnp.float32(H))
    keys = jax.random.split(key, 6)
    u = lambda kk, shape: jax.random.uniform(kk, shape, jnp.float32, -k, k)
    w_ih = u(keys[0], (4 * H, INPUT_SIZE))
    w_hh = u(keys[1], (4 * H, H))
    b_ih = u(keys[2], (4 * H,))
    b_hh = u(keys[3], (4 * H,))
    w_out = u(keys[4], (N_CLASSES, H))
    b_out = u(keys[5], (N_CLASSES,))
    return w_ih, w_hh, b_ih, b_hh, w_out, b_out


if __name__ == "__main__":
    key = jax.random.PRNGKey(0)
    k_x, k_p = jax.random.split(key)

    B, T = 2, 8
    x = jax.random.normal(k_x, (B, T, INPUT_SIZE), jnp.float32)
    params = init_params(k_p)

    out = rnn_forward(x, *params)
    out = jax.block_until_ready(out)

    ref = rnn_forward_ref(x, *params)
    assert out.shape == (B, N_CLASSES)
    assert jnp.allclose(out, ref, atol=5e-3, rtol=5e-3), (out, ref)

    print("KERNEL_OK")
</pallas_src>

<mosaic_0001>
module attributes {stable_mosaic.version = 11 : i64} {
  func.func @_lstm_kernel(%arg0: memref<2x8x28xf32, #tpu.memory_space<vmem>>, %arg1: memref<28x256xf32, #tpu.memory_space<vmem>>, %arg2: memref<64x256xf32, #tpu.memory_space<vmem>>, %arg3: memref<1x256xf32, #tpu.memory_space<vmem>>, %arg4: memref<64x10xf32, #tpu.memory_space<vmem>>, %arg5: memref<1x10xf32, #tpu.memory_space<vmem>>, %arg6: memref<2x10xf32, #tpu.memory_space<vmem>>) attributes {dimension_semantics = [], scalar_prefetch = 0 : i64, scratch_operands = 0 : i64, tpu.core_type = #tpu.core_type<tc>} {
    %c0 = arith.constant 0 : index
    %c0_0 = arith.constant 0 : index
    %c0_1 = arith.constant 0 : index
    %0 = vector.load %arg0[%c0, %c0_0, %c0_1] : memref<2x8x28xf32, #tpu.memory_space<vmem>>, vector<2x8x28xf32>
    %1 = vector.shape_cast %0 : vector<2x8x28xf32> to vector<16x28xf32>
    %c0_2 = arith.constant 0 : index
    %c0_3 = arith.constant 0 : index
    %2 = vector.load %arg1[%c0_2, %c0_3] : memref<28x256xf32, #tpu.memory_space<vmem>>, vector<28x256xf32>
    %cst = arith.constant dense<0.000000e+00> : vector<16x256xf32>
    %3 = tpu.matmul %1, %2, %cst {dimension_numbers = #tpu.dot_dimension_numbers<[1], [0], [0], [1], [0, 0, 1, 1], [], []>} : vector<16x28xf32>, vector<28x256xf32>, vector<16x256xf32> -> vector<16x256xf32>
    %c0_4 = arith.constant 0 : index
    %c0_5 = arith.constant 0 : index
    %4 = vector.load %arg3[%c0_4, %c0_5] : memref<1x256xf32, #tpu.memory_space<vmem>>, vector<1x256xf32>
    %5 = vector.broadcast %4 : vector<1x256xf32> to vector<16x256xf32>
    %6 = arith.addf %3, %5 : vector<16x256xf32>
    %7 = vector.shape_cast %6 : vector<16x256xf32> to vector<2x8x256xf32>
    %c0_6 = arith.constant 0 : index
    %c0_7 = arith.constant 0 : index
    %8 = vector.load %arg2[%c0_6, %c0_7] : memref<64x256xf32, #tpu.memory_space<vmem>>, vector<64x256xf32>
    %cst_8 = arith.constant 0.000000e+00 : f32
    %9 = vector.broadcast %cst_8 : f32 to vector<2x64xf32>
    %cst_9 = arith.constant 0.000000e+00 : f32
    %10 = vector.broadcast %cst_9 : f32 to vector<2x64xf32>
    %11 = vector.extract_strided_slice %7 {offsets = [0, 0, 0], sizes = [2, 1, 256], strides = [1, 1, 1]} : vector<2x8x256xf32> to vector<2x1x256xf32>
    %12 = vector.shape_cast %11 : vector<2x1x256xf32> to vector<2x256xf32>
    %cst_10 = arith.constant dense<0.000000e+00> : vector<2x256xf32>
    %13 = tpu.matmul %9, %8, %cst_10 {dimension_numbers = #tpu.dot_dimension_numbers<[1], [0], [0], [1], [0, 0, 1, 1], [], []>} : vector<2x64xf32>, vector<64x256xf32>, vector<2x256xf32> -> vector<2x256xf32>
    %14 = arith.addf %12, %13 : vector<2x256xf32>
    %15 = vector.extract_strided_slice %14 {offsets = [0, 0], sizes = [2, 192], strides = [1, 1]} : vector<2x256xf32> to vector<2x192xf32>
    %16 = arith.negf %15 : vector<2x192xf32>
    %17 = math.exp %16 : vector<2x192xf32>
    %cst_11 = arith.constant 1.000000e+00 : f32
    %18 = vector.broadcast %cst_11 : f32 to vector<2x192xf32>
    %19 = arith.addf %18, %17 : vector<2x192xf32>
    %20 = arith.divf %18, %19 : vector<2x192xf32>
    %21 = vector.extract_strided_slice %14 {offsets = [0, 192], sizes = [2, 64], strides = [1, 1]} : vector<2x256xf32> to vector<2x64xf32>
    %22 = math.tanh %21 : vector<2x64xf32>
    %23 = vector.extract_strided_slice %20 {offsets = [0, 0], sizes = [2, 64], strides = [1, 1]} : vector<2x192xf32> to vector<2x64xf32>
    %24 = vector.extract_strided_slice %20 {offsets = [0, 64], sizes = [2, 64], strides = [1, 1]} : vector<2x192xf32> to vector<2x64xf32>
    %25 = vector.extract_strided_slice %20 {offsets = [0, 128], sizes = [2, 64], strides = [1, 1]} : vector<2x192xf32> to vector<2x64xf32>
    %26 = arith.mulf %24, %10 : vector<2x64xf32>
    %27 = arith.mulf %23, %22 : vector<2x64xf32>
    %28 = arith.addf %26, %27 : vector<2x64xf32>
    %29 = math.tanh %28 : vector<2x64xf32>
    %30 = arith.mulf %25, %29 : vector<2x64xf32>
    %31 = vector.extract_strided_slice %7 {offsets = [0, 1, 0], sizes = [2, 1, 256], strides = [1, 1, 1]} : vector<2x8x256xf32> to vector<2x1x256xf32>
    %32 = vector.shape_cast %31 : vector<2x1x256xf32> to vector<2x256xf32>
    %cst_12 = arith.constant dense<0.000000e+00> : vector<2x256xf32>
    %33 = tpu.matmul %30, %8, %cst_12 {dimension_numbers = #tpu.dot_dimension_numbers<[1], [0], [0], [1], [0, 0, 1, 1], [], []>} : vector<2x64xf32>, vector<64x256xf32>, vector<2x256xf32> -> vector<2x256xf32>
    %34 = arith.addf %32, %33 : vector<2x256xf32>
    %35 = vector.extract_strided_slice %34 {offsets = [0, 0], sizes = [2, 192], strides = [1, 1]} : vector<2x256xf32> to vector<2x192xf32>
    %36 = arith.negf %35 : vector<2x192xf32>
    %37 = math.exp %36 : vector<2x192xf32>
    %cst_13 = arith.constant 1.000000e+00 : f32
    %38 = vector.broadcast %cst_13 : f32 to vector<2x192xf32>
    %39 = arith.addf %38, %37 : vector<2x192xf32>
    %40 = arith.divf %38, %39 : vector<2x192xf32>
    %41 = vector.extract_strided_slice %34 {offsets = [0, 192], sizes = [2, 64], strides = [1, 1]} : vector<2x256xf32> to vector<2x64xf32>
    %42 = math.tanh %41 : vector<2x64xf32>
    %43 = vector.extract_strided_slice %40 {offsets = [0, 0], sizes = [2, 64], strides = [1, 1]} : vector<2x192xf32> to vector<2x64xf32>
    %44 = vector.extract_strided_slice %40 {offsets = [0, 64], sizes = [2, 64], strides = [1, 1]} : vector<2x192xf32> to vector<2x64xf32>
    %45 = vector.extract_strided_slice %40 {offsets = [0, 128], sizes = [2, 64], strides = [1, 1]} : vector<2x192xf32> to vector<2x64xf32>
    %46 = arith.mulf %44, %28 : vector<2x64xf32>
    %47 = arith.mulf %43, %42 : vector<2x64xf32>
    %48 = arith.addf %46, %47 : vector<2x64xf32>
    %49 = math.tanh %48 : vector<2x64xf32>
    %50 = arith.mulf %45, %49 : vector<2x64xf32>
    %51 = vector.extract_strided_slice %7 {offsets = [0, 2, 0], sizes = [2, 1, 256], strides = [1, 1, 1]} : vector<2x8x256xf32> to vector<2x1x256xf32>
    %52 = vector.shape_cast %51 : vector<2x1x256xf32> to vector<2x256xf32>
    %cst_14 = arith.constant dense<0.000000e+00> : vector<2x256xf32>
    %53 = tpu.matmul %50, %8, %cst_14 {dimension_numbers = #tpu.dot_dimension_numbers<[1], [0], [0], [1], [0, 0, 1, 1], [], []>} : vector<2x64xf32>, vector<64x256xf32>, vector<2x256xf32> -> vector<2x256xf32>
    %54 = arith.addf %52, %53 : vector<2x256xf32>
    %55 = vector.extract_strided_slice %54 {offsets = [0, 0], sizes = [2, 192], strides = [1, 1]} : vector<2x256xf32> to vector<2x192xf32>
    %56 = arith.negf %55 : vector<2x192xf32>
    %57 = math.exp %56 : vector<2x192xf32>
    %cst_15 = arith.constant 1.000000e+00 : f32
    %58 = vector.broadcast %cst_15 : f32 to vector<2x192xf32>
    %59 = arith.addf %58, %57 : vector<2x192xf32>
    %60 = arith.divf %58, %59 : vector<2x192xf32>
    %61 = vector.extract_strided_slice %54 {offsets = [0, 192], sizes = [2, 64], strides = [1, 1]} : vector<2x256xf32> to vector<2x64xf32>
    %62 = math.tanh %61 : vector<2x64xf32>
    %63 = vector.extract_strided_slice %60 {offsets = [0, 0], sizes = [2, 64], strides = [1, 1]} : vector<2x192xf32> to vector<2x64xf32>
    %64 = vector.extract_strided_slice %60 {offsets = [0, 64], sizes = [2, 64], strides = [1, 1]} : vector<2x192xf32> to vector<2x64xf32>
    %65 = vector.extract_strided_slice %60 {offsets = [0, 128], sizes = [2, 64], strides = [1, 1]} : vector<2x192xf32> to vector<2x64xf32>
    %66 = arith.mulf %64, %48 : vector<2x64xf32>
    %67 = arith.mulf %63, %62 : vector<2x64xf32>
    %68 = arith.addf %66, %67 : vector<2x64xf32>
    %69 = math.tanh %68 : vector<2x64xf32>
    %70 = arith.mulf %65, %69 : vector<2x64xf32>
    %71 = vector.extract_strided_slice %7 {offsets = [0, 3, 0], sizes = [2, 1, 256], strides = [1, 1, 1]} : vector<2x8x256xf32> to vector<2x1x256xf32>
    %72 = vector.shape_cast %71 : vector<2x1x256xf32> to vector<2x256xf32>
    %cst_16 = arith.constant dense<0.000000e+00> : vector<2x256xf32>
    %73 = tpu.matmul %70, %8, %cst_16 {dimension_numbers = #tpu.dot_dimension_numbers<[1], [0], [0], [1], [0, 0, 1, 1], [], []>} : vector<2x64xf32>, vector<64x256xf32>, vector<2x256xf32> -> vector<2x256xf32>
    %74 = arith.addf %72, %73 : vector<2x256xf32>
    %75 = vector.extract_strided_slice %74 {offsets = [0, 0], sizes = [2, 192], strides = [1, 1]} : vector<2x256xf32> to vector<2x192xf32>
    %76 = arith.negf %75 : vector<2x192xf32>
    %77 = math.exp %76 : vector<2x192xf32>
    %cst_17 = arith.constant 1.000000e+00 : f32
    %78 = vector.broadcast %cst_17 : f32 to vector<2x192xf32>
    %79 = arith.addf %78, %77 : vector<2x192xf32>
    %80 = arith.divf %78, %79 : vector<2x192xf32>
    %81 = vector.extract_strided_slice %74 {offsets = [0, 192], sizes = [2, 64], strides = [1, 1]} : vector<2x256xf32> to vector<2x64xf32>
    %82 = math.tanh %81 : vector<2x64xf32>
    %83 = vector.extract_strided_slice %80 {offsets = [0, 0], sizes = [2, 64], strides = [1, 1]} : vector<2x192xf32> to vector<2x64xf32>
    %84 = vector.extract_strided_slice %80 {offsets = [0, 64], sizes = [2, 64], strides = [1, 1]} : vector<2x192xf32> to vector<2x64xf32>
    %85 = vector.extract_strided_slice %80 {offsets = [0, 128], sizes = [2, 64], strides = [1, 1]} : vector<2x192xf32> to vector<2x64xf32>
    %86 = arith.mulf %84, %68 : vector<2x64xf32>
    %87 = arith.mulf %83, %82 : vector<2x64xf32>
    %88 = arith.addf %86, %87 : vector<2x64xf32>
    %89 = math.tanh %88 : vector<2x64xf32>
    %90 = arith.mulf %85, %89 : vector<2x64xf32>
    %91 = vector.extract_strided_slice %7 {offsets = [0, 4, 0], sizes = [2, 1, 256], strides = [1, 1, 1]} : vector<2x8x256xf32> to vector<2x1x256xf32>
    %92 = vector.shape_cast %91 : vector<2x1x256xf32> to vector<2x256xf32>
    %cst_18 = arith.constant dense<0.000000e+00> : vector<2x256xf32>
    %93 = tpu.matmul %90, %8, %cst_18 {dimension_numbers = #tpu.dot_dimension_numbers<[1], [0], [0], [1], [0, 0, 1, 1], [], []>} : vector<2x64xf32>, vector<64x256xf32>, vector<2x256xf32> -> vector<2x256xf32>
    %94 = arith.addf %92, %93 : vector<2x256xf32>
    %95 = vector.extract_strided_slice %94 {offsets = [0, 0], sizes = [2, 192], strides = [1, 1]} : vector<2x256xf32> to vector<2x192xf32>
    %96 = arith.negf %95 : vector<2x192xf32>
    %97 = math.exp %96 : vector<2x192xf32>
    %cst_19 = arith.constant 1.000000e+00 : f32
    %98 = vector.broadcast %cst_19 : f32 to vector<2x192xf32>
    %99 = arith.addf %98, %97 : vector<2x192xf32>
    %100 = arith.divf %98, %99 : vector<2x192xf32>
    %101 = vector.extract_strided_slice %94 {offsets = [0, 192], sizes = [2, 64], strides = [1, 1]} : vector<2x256xf32> to vector<2x64xf32>
    %102 = math.tanh %101 : vector<2x64xf32>
    %103 = vector.extract_strided_slice %100 {offsets = [0, 0], sizes = [2, 64], strides = [1, 1]} : vector<2x192xf32> to vector<2x64xf32>
    %104 = vector.extract_strided_slice %100 {offsets = [0, 64], sizes = [2, 64], strides = [1, 1]} : vector<2x192xf32> to vector<2x64xf32>
    %105 = vector.extract_strided_slice %100 {offsets = [0, 128], sizes = [2, 64], strides = [1, 1]} : vector<2x192xf32> to vector<2x64xf32>
    %106 = arith.mulf %104, %88 : vector<2x64xf32>
    %107 = arith.mulf %103, %102 : vector<2x64xf32>
    %108 = arith.addf %106, %107 : vector<2x64xf32>
    %109 = math.tanh %108 : vector<2x64xf32>
    %110 = arith.mulf %105, %109 : vector<2x64xf32>
    %111 = vector.extract_strided_slice %7 {offsets = [0, 5, 0], sizes = [2, 1, 256], strides = [1, 1, 1]} : vector<2x8x256xf32> to vector<2x1x256xf32>
    %112 = vector.shape_cast %111 : vector<2x1x256xf32> to vector<2x256xf32>
    %cst_20 = arith.constant dense<0.000000e+00> : vector<2x256xf32>
    %113 = tpu.matmul %110, %8, %cst_20 {dimension_numbers = #tpu.dot_dimension_numbers<[1], [0], [0], [1], [0, 0, 1, 1], [], []>} : vector<2x64xf32>, vector<64x256xf32>, vector<2x256xf32> -> vector<2x256xf32>
    %114 = arith.addf %112, %113 : vector<2x256xf32>
    %115 = vector.extract_strided_slice %114 {offsets = [0, 0], sizes = [2, 192], strides = [1, 1]} : vector<2x256xf32> to vector<2x192xf32>
    %116 = arith.negf %115 : vector<2x192xf32>
    %117 = math.exp %116 : vector<2x192xf32>
    %cst_21 = arith.constant 1.000000e+00 : f32
    %118 = vector.broadcast %cst_21 : f32 to vector<2x192xf32>
    %119 = arith.addf %118, %117 : vector<2x192xf32>
    %120 = arith.divf %118, %119 : vector<2x192xf32>
    %121 = vector.extract_strided_slice %114 {offsets = [0, 192], sizes = [2, 64], strides = [1, 1]} : vector<2x256xf32> to vector<2x64xf32>
    %122 = math.tanh %121 : vector<2x64xf32>
    %123 = vector.extract_strided_slice %120 {offsets = [0, 0], sizes = [2, 64], strides = [1, 1]} : vector<2x192xf32> to vector<2x64xf32>
    %124 = vector.extract_strided_slice %120 {offsets = [0, 64], sizes = [2, 64], strides = [1, 1]} : vector<2x192xf32> to vector<2x64xf32>
    %125 = vector.extract_strided_slice %120 {offsets = [0, 128], sizes = [2, 64], strides = [1, 1]} : vector<2x192xf32> to vector<2x64xf32>
    %126 = arith.mulf %124, %108 : vector<2x64xf32>
    %127 = arith.mulf %123, %122 : vector<2x64xf32>
    %128 = arith.addf %126, %127 : vector<2x64xf32>
    %129 = math.tanh %128 : vector<2x64xf32>
    %130 = arith.mulf %125, %129 : vector<2x64xf32>
    %131 = vector.extract_strided_slice %7 {offsets = [0, 6, 0], sizes = [2, 1, 256], strides = [1, 1, 1]} : vector<2x8x256xf32> to vector<2x1x256xf32>
    %132 = vector.shape_cast %131 : vector<2x1x256xf32> to vector<2x256xf32>
    %cst_22 = arith.constant dense<0.000000e+00> : vector<2x256xf32>
    %133 = tpu.matmul %130, %8, %cst_22 {dimension_numbers = #tpu.dot_dimension_numbers<[1], [0], [0], [1], [0, 0, 1, 1], [], []>} : vector<2x64xf32>, vector<64x256xf32>, vector<2x256xf32> -> vector<2x256xf32>
    %134 = arith.addf %132, %133 : vector<2x256xf32>
    %135 = vector.extract_strided_slice %134 {offsets = [0, 0], sizes = [2, 192], strides = [1, 1]} : vector<2x256xf32> to vector<2x192xf32>
    %136 = arith.negf %135 : vector<2x192xf32>
    %137 = math.exp %136 : vector<2x192xf32>
    %cst_23 = arith.constant 1.000000e+00 : f32
    %138 = vector.broadcast %cst_23 : f32 to vector<2x192xf32>
    %139 = arith.addf %138, %137 : vector<2x192xf32>
    %140 = arith.divf %138, %139 : vector<2x192xf32>
    %141 = vector.extract_strided_slice %134 {offsets = [0, 192], sizes = [2, 64], strides = [1, 1]} : vector<2x256xf32> to vector<2x64xf32>
    %142 = math.tanh %141 : vector<2x64xf32>
    %143 = vector.extract_strided_slice %140 {offsets = [0, 0], sizes = [2, 64], strides = [1, 1]} : vector<2x192xf32> to vector<2x64xf32>
    %144 = vector.extract_strided_slice %140 {offsets = [0, 64], sizes = [2, 64], strides = [1, 1]} : vector<2x192xf32> to vector<2x64xf32>
    %145 = vector.extract_strided_slice %140 {offsets = [0, 128], sizes = [2, 64], strides = [1, 1]} : vector<2x192xf32> to vector<2x64xf32>
    %146 = arith.mulf %144, %128 : vector<2x64xf32>
    %147 = arith.mulf %143, %142 : vector<2x64xf32>
    %148 = arith.addf %146, %147 : vector<2x64xf32>
    %149 = math.tanh %148 : vector<2x64xf32>
    %150 = arith.mulf %145, %149 : vector<2x64xf32>
    %151 = vector.extract_strided_slice %7 {offsets = [0, 7, 0], sizes = [2, 1, 256], strides = [1, 1, 1]} : vector<2x8x256xf32> to vector<2x1x256xf32>
    %152 = vector.shape_cast %151 : vector<2x1x256xf32> to vector<2x256xf32>
    %cst_24 = arith.constant dense<0.000000e+00> : vector<2x256xf32>
    %153 = tpu.matmul %150, %8, %cst_24 {dimension_numbers = #tpu.dot_dimension_numbers<[1], [0], [0], [1], [0, 0, 1, 1], [], []>} : vector<2x64xf32>, vector<64x256xf32>, vector<2x256xf32> -> vector<2x256xf32>
    %154 = arith.addf %152, %153 : vector<2x256xf32>
    %155 = vector.extract_strided_slice %154 {offsets = [0, 0], sizes = [2, 192], strides = [1, 1]} : vector<2x256xf32> to vector<2x192xf32>
    %156 = arith.negf %155 : vector<2x192xf32>
    %157 = math.exp %156 : vector<2x192xf32>
    %cst_25 = arith.constant 1.000000e+00 : f32
    %158 = vector.broadcast %cst_25 : f32 to vector<2x192xf32>
    %159 = arith.addf %158, %157 : vector<2x192xf32>
    %160 = arith.divf %158, %159 : vector<2x192xf32>
    %161 = vector.extract_strided_slice %154 {offsets = [0, 192], sizes = [2, 64], strides = [1, 1]} : vector<2x256xf32> to vector<2x64xf32>
    %162 = math.tanh %161 : vector<2x64xf32>
    %163 = vector.extract_strided_slice %160 {offsets = [0, 0], sizes = [2, 64], strides = [1, 1]} : vector<2x192xf32> to vector<2x64xf32>
    %164 = vector.extract_strided_slice %160 {offsets = [0, 64], sizes = [2, 64], strides = [1, 1]} : vector<2x192xf32> to vector<2x64xf32>
    %165 = vector.extract_strided_slice %160 {offsets = [0, 128], sizes = [2, 64], strides = [1, 1]} : vector<2x192xf32> to vector<2x64xf32>
    %166 = arith.mulf %164, %148 : vector<2x64xf32>
    %167 = arith.mulf %163, %162 : vector<2x64xf32>
    %168 = arith.addf %166, %167 : vector<2x64xf32>
    %169 = math.tanh %168 : vector<2x64xf32>
    %170 = arith.mulf %165, %169 : vector<2x64xf32>
    %c0_26 = arith.constant 0 : index
    %c0_27 = arith.constant 0 : index
    %171 = vector.load %arg4[%c0_26, %c0_27] : memref<64x10xf32, #tpu.memory_space<vmem>>, vector<64x10xf32>
    %cst_28 = arith.constant dense<0.000000e+00> : vector<2x10xf32>
    %172 = tpu.matmul %170, %171, %cst_28 {dimension_numbers = #tpu.dot_dimension_numbers<[1], [0], [0], [1], [0, 0, 1, 1], [], []>} : vector<2x64xf32>, vector<64x10xf32>, vector<2x10xf32> -> vector<2x10xf32>
    %c0_29 = arith.constant 0 : index
    %c0_30 = arith.constant 0 : index
    %173 = vector.load %arg5[%c0_29, %c0_30] : memref<1x10xf32, #tpu.memory_space<vmem>>, vector<1x10xf32>
    %174 = vector.broadcast %173 : vector<1x10xf32> to vector<2x10xf32>
    %175 = arith.addf %172, %174 : vector<2x10xf32>
    %c0_31 = arith.constant 0 : index
    %c0_32 = arith.constant 0 : index
    %176 = vector.load %arg6[%c0_31, %c0_32] : memref<2x10xf32, #tpu.memory_space<vmem>>, vector<2x10xf32>
    tpu.vector_store %arg6[%c0_31, %c0_32], %175 {strides = array<i32>} : memref<2x10xf32, #tpu.memory_space<vmem>>, vector<2x10xf32>,
    return
  }
}

</mosaic_0001>

<bundles_post_ra>
// kernel: rnn_forward.1
= control target key start
LH: loop header
LB: loop body
LE: loop exit
PB: predicated region body
PF: predicated region fallthrough
CT: control target
= control target key end

     0   :  { %vm53_vm0 = vcmask 1043456   ;;  %v1956_v7 = vmov 0.0   ;;  %vm1957_vm1 = vmmov 1   ;;  %vm46_vm3 = vcmask 228352   ;;  %s2386_s0 = inlined_call_operand.vmem [shape: f32[2,8,28], index: 0, kind: input, shape index: {}]   ;;  %s2387_s1 = inlined_call_operand.vmem [shape: f32[28,256], index: 1, kind: input, shape index: {}]   ;;  %s2388_s2 = inlined_call_operand.vmem [shape: f32[64,256], index: 2, kind: input, shape index: {}]   ;;  %s2389_s3 = inlined_call_operand.vmem [shape: f32[1,256], index: 3, kind: input, shape index: {}]   ;;  %s2390_s4 = inlined_call_operand.vmem [shape: f32[64,10], index: 4, kind: input, shape index: {}]   ;;  %s2391_s5 = inlined_call_operand.vmem [shape: f32[1,10], index: 5, kind: input, shape index: {}]   ;;  %s2392_s6 = inlined_call_operand.hbm [shape: f32[2,10], index: 6, kind: output, shape index: {}]  }
   0x1   :  { %v138_v0 = vld [vmem:[%s2388_s2 + $0x8] sm:$0xff]  ;;  %v140_v1 = vld [vmem:[%s2388_s2 + $0x18] sm:$0xff]  ;;  %v137_v2 = vld [vmem:[%s2388_s2] sm:$0xff]  ;;  %124 = vmatprep.mubr.f32.mxu0 %v1956_v7  ;;  %221 = vmatprep.mubr.f32.mxu1 %v1956_v7 }
   0x2   :  { %v2006_v3 = vpack.c.bf16 %v140_v1, %v138_v0  ;;  %v139_v4 = vld [vmem:[%s2388_s2 + $0x10] sm:$0xff]  ;;  %v27_v5 = vld [vmem:[%s2387_s1 + $0x8] sm:$0xff]  ;;  %v29_v6 = vld [vmem:[%s2387_s1 + $0x18] sm:$0xff] }
   0x3   :  { %v2019_v8 = vpack.c.bf16 %v139_v4, %v137_v2  ;;  %v1584_v9 = vpack.c.bf16 %v29_v6, %v27_v5  ;;  %v26_v10 = vld [vmem:[%s2387_s1] sm:$0xff]  ;;  %v28_v11 = vld [vmem:[%s2387_s1 + $0x10] sm:$0xff]  ;;  %v142_v12 = vld [vmem:[%s2388_s2 + $0x28] sm:$0xff] }
   0x4   :  { %1595 = vmatprep.subr.bf16.mxu1 %v2006_v3  ;;  %v1586_v13 = vpack.c.bf16 %v28_v11, %v26_v10  ;;  %v144_v14 = vld [vmem:[%s2388_s2 + $0x38] sm:$0xff]  ;;  %v141_v15 = vld [vmem:[%s2388_s2 + $0x20] sm:$0xff]  ;;  %v143_v16 = vld [vmem:[%s2388_s2 + $0x30] sm:$0xff] }
   0x5   :  { %1597 = vmatpush1.bf16.msra.mxu1 %v2019_v8  ;;  %1585 = vmatprep.subr.bf16.mxu0 %v1584_v9  ;;  %v2041_v17 = vpack.c.bf16 %v144_v14, %v142_v12  ;;  %v2043_v18 = vpack.c.bf16 %v143_v16, %v141_v15  ;;  %v31_v19 = vld [vmem:[%s2387_s1 + $0x28] sm:$0xff]  ;;  %v33_v20 = vld [vmem:[%s2387_s1 + $0x38] sm:$0xf]  ;;  %vm2052_vm2 = vmpackc.low %vm53_vm0, %vm1957_vm1 }
   0x6   :  { %1587 = vmatpush1.bf16.msra.mxu0 %v1586_v13  ;;  %v1588_v22 = vpack.c.bf16 %v33_v20, %v31_v19  ;;  %v30_v23 = vld [vmem:[%s2387_s1 + $0x20] sm:$0xff]  ;;  %v32_v24 = vld [vmem:[%s2387_s1 + $0x30] sm:$0xf]  ;;  %v146_v25 = vld [vmem:[%s2388_s2 + $0x48] sm:$0xff] }
   0x7   :  { %1599 = vmatprep.subr.bf16.mxu1 %v2041_v17  ;;  %v1591_v26 = vpack.c.bf16 %v32_v24, %v30_v23  ;;  %v148_v27 = vld [vmem:[%s2388_s2 + $0x58] sm:$0xff]  ;;  %v145_v28 = vld [vmem:[%s2388_s2 + $0x40] sm:$0xff]  ;;  %v147_v29 = vld [vmem:[%s2388_s2 + $0x50] sm:$0xff] }
   0x8   :  { %1590 = vmatprep.subr.msk.bf16.mxu0 %vm2052_vm2, %v1588_v22  ;;  %v2077_v30 = vpack.c.bf16 %v148_v27, %v146_v25  ;;  %v150_v31 = vld [vmem:[%s2388_s2 + $0x68] sm:$0xff]  ;;  %v152_v32 = vld [vmem:[%s2388_s2 + $0x78] sm:$0xff]  ;;  %v2086_v33 = vpack.c.bf16 %v147_v29, %v145_v28  ;;  %v24_v34 = vld [vmem:[%s2386_s0] sm:$0xff] }
   0x9   :  { %1601 = vmatpush1.bf16.msra.mxu1 %v2043_v18  ;;  %v2094_v35 = vpack.c.bf16 %v152_v32, %v150_v31  ;;  %v149_v36 = vld [vmem:[%s2388_s2 + $0x60] sm:$0xff]  ;;  %v151_v37 = vld [vmem:[%s2388_s2 + $0x70] sm:$0xff] }
   0xa   :  { %1593 = vmatpush1.bf16.msk.msra.mxu0 %vm2052_vm2, %v1591_v26  ;;  %1603 = vmatprep.subr.bf16.mxu1 %v2077_v30 }
   0xb   :  { %11 = vsyncpa [#allocation3], 0  ;;  %1611 = vmatprep.subr.bf16.mxu0 %v2006_v3  ;;  %v2104_v38 = vpack.c.bf16 %v151_v37, %v149_v36  ;;  %v25_v39 = vld [vmem:[%s2386_s0 + $0x8] sm:$0xff]  ;;  %v36_v40 = vlaneseq  ;;  %v34_v45 = vld [vmem:[%s2389_s3] sm:$0x3]  ;;  %s1958_s24 = smov 64  }
   0xc   :  { %vm303_vm4 = vcmask 1041409   ;;  %vm153_vm5 = vcmask 523264   ;;  %vm1960_vm6 = vmmov 0   ;;  %s1961_s16 = smov [#allocation2]   ;;  %vm1495_vm7 = vcmask 74752  }
   0xd   :  { %1605 = vmatpush1.bf16.msra.mxu1 %v2086_v33  ;;  %1513 = vmatmul.mubr.msk.f32.vlgmr.msra.gmra.mrb[0].mxu0 %vm46_vm3, %v24_v34  ;;  %v37_v41 = vshrl.u32 %v36_v40, 7  ;;  %s1503_s17 = sshll.u32 %s1961_s16, 4  ;;  %s1504_s17 = int_to_ptr.vmem [resolvable:$true] %s1503_s17 }
   0xe   :  { %1607 = vmatprep.subr.bf16.mxu1 %v2094_v35  ;;  %130 = vmatprep.mubr.f32.mxu0 %v1956_v7  ;;  %s1932_s18 = scalar_lea.vmem %s1504_s17, 32  ;;  %p1937_p1 = scmp.lt.s32.totalorder %s1504_s17, %s1504_s17 }
   0xf   :  { %1613 = vmatpush1.bf16.msra.mxu0 %v2019_v8  ;;  %v42_v44 = vsub.s32 1, %v37_v41  ;;  %v38_v58 = vsub.s32 0, %v37_v41  ;;  %p1933_p0 = scmp.ne.s32.totalorder %s1504_s17, %s1932_s18  ;;  %p1938_p2 = scmp.lt.s32.totalorder %s1932_s18, %s1932_s18 }
  0x10   :  { %1615 = vmatprep.subr.bf16.mxu0 %v2041_v17 }
  0x11   :  { %1609 = vmatpush1.bf16.msra.mxu1 %v2104_v38  ;;  %1514 = vmatmul.mubr.msk.f32.gmra.mrb[2].mxu0 %vm46_vm3, %v25_v39  ;;  %v43_v48 = vrot.slane %v34_v45, %v42_v44  ;;  %v39_v59 = vrot.slane %v34_v45, %v38_v58  ;;  %p1939_p3 = por %p1938_p2, %p1937_p1 }
  0x12   :  { %371 = vmatprep.mubr.f32.mxu0 %v1956_v7  ;;  %1627 = vmatprep.subr.bf16.mxu1 %v2006_v3 }
  0x13   :  { %1617 = vmatpush1.bf16.msra.mxu0 %v2043_v18  ;;  %p1940_p4 = pnand %p1939_p3, %p1933_p0 }
  0x14   :  { %222 = vmatmul.mubr.f32.vlgmr.msra.gmra.mrb[0].mxu1 %v1956_v7  ;;  %1619 = vmatprep.subr.bf16.mxu0 %v2077_v30 }
  0x15   :  { %1629 = vmatpush1.bf16.msra.mxu1 %v2019_v8  ;;  %526 = vmatprep.mubr.f32.mxu1 %v1956_v7 }
  0x16   :  { %1631 = vmatprep.subr.bf16.mxu1 %v2041_v17 }
  0x17   :  { %1621 = vmatpush1.bf16.msra.mxu0 %v2086_v33 }
  0x18   :  { %1623 = vmatprep.subr.bf16.mxu0 %v2094_v35 }
  0x19   :  { %1633 = vmatpush1.bf16.msra.mxu1 %v2043_v18 }
  0x1a   :  { %1635 = vmatprep.subr.bf16.mxu1 %v2077_v30 }
  0x1b   :  { %1625 = vmatpush1.bf16.msra.mxu0 %v2104_v38 }
  0x1c   :  { %1643 = vmatprep.subr.bf16.mxu0 %v2006_v3 }
  0x1d   :  { %1637 = vmatpush1.bf16.msra.mxu1 %v2086_v33 }
  0x1e   :  { %1639 = vmatprep.subr.bf16.mxu1 %v2094_v35 }
  0x21   :  { %1641 = vmatpush1.bf16.msra.mxu1 %v2104_v38 }
  0x22   :  { %1659 = vmatprep.subr.bf16.mxu1 %v2006_v3 }
  0xe0   :  { %v126_v42 = vpop.f32.mrb[0].mxu0 }
  0xe1   :  { %v128_v43 = vpop.f32.mrb[1].mxu0  ;;  %v2146_v63 = vadd.f32 %v126_v42, %v39_v59 }
  0xe2   :  { %v2138_v54 = vadd.f32 %v128_v43, %v43_v48 }
  0xe4   :  { %v132_v46 = vpop.f32.mrb[2].mxu0 }
  0xe5   :  { %v134_v47 = vpop.f32.mrb[3].mxu0  ;;  %v2143_v60 = vadd.f32 %v132_v46, %v39_v59 }
  0xe6   :  { %v2135_v50 = vadd.f32 %v134_v47, %v43_v48 }
  0xe7   :  { %v223_v49 = vpop.f32.mrb[0].mxu1 }
  0xe8   :  { %v225_v51 = vpop.f32.mrb[1].mxu1  ;;  %v230_v61 = vrot.slane %v223_v49, 1  ;;  %v236_v0 = vadd.f32 %v223_v49, %v2146_v63 }
  0xe9   :  { %v231_v52 = vrot.slane %v225_v51, 1  ;;  %v237_v55 = vadd.f32 %v225_v51, %v2138_v54 }
  0xea   :  { %v238_v62 = vadd.f32 %v230_v61, %v2143_v60  ;;  %v1515_v2 = vmul.f32 -1.442695, %v236_v0 }
  0xeb   :  { %v239_v53 = vadd.f32 %v231_v52, %v2135_v50  ;;  %v1516_v27 = vmul.f32 -1.442695, %v237_v55 }
  0xec   :  { %v1517_v1 = vmul.f32 -1.442695, %v238_v62 }
  0xed   :  { %1740 = vtanh.f32 %v239_v53  ;;  %v1518_v26 = vmul.f32 -1.442695, %v239_v53 }
  0xee   :  { %1742 = vtanh.f32 %v237_v55 }
  0xef   :  { %1744 = vpow2.f32 %v1517_v1 }
  0xf0   :  { %1746 = vpow2.f32 %v1515_v2 }
  0xf7   :  { %v1741_v56 = vpop.eup %1740 }
  0xf8   :  { %272 = vrot.lane.b32.xlu0 %v1741_v56, %s1958_s24  ;;  %v1743_v57 = vpop.eup %1742 }
  0xf9   :  { %v1745_v4 = vpop.eup %1744 }
  0xfa   :  { %v254_v5 = vadd.f32 1.0, %v1745_v4  ;;  %v1747_v6 = vpop.eup %1746 }
  0xfb   :  { %v252_v9 = vadd.f32 1.0, %v1747_v6 }
  0xfc   :  { %270 = vrot.lane.b32.xlu0 %v1743_v57, %s1958_s24  ;;  %1748 = vrcp.f32 %v254_v5 }
  0xfd   :  { %1750 = vrcp.f32 %v252_v9 }
 0x106   :  { %v1749_v10 = vpop.eup %1748 }
 0x107   :  { %v1751_v13 = vpop.eup %1750  ;;  %v267_v16 = vmul.f32 0.0, %v1749_v10 }
 0x108   :  { %v266_v21 = vmul.f32 0.0, %v1751_v13 }
 0x16a   :  { %v273_v11 = vpop.permute.xlu0 %272 }
 0x16b   :  { %v277_v12 = vmul.f32 %v1749_v10, %v273_v11 }
 0x16d   :  { %282 = vrot.lane.b32.xlu1 %v277_v12, %s1958_s24 }
 0x16e   :  { %v271_v14 = vpop.permute.xlu0 %270 }
 0x16f   :  { %v276_v15 = vmul.f32 %v1751_v13, %v271_v14 }
 0x171   :  { %280 = vrot.lane.b32.xlu1 %v276_v15, %s1958_s24 }
 0x1df   :  { %v283_v19 = vpop.permute.xlu1 %282 }
 0x1e0   :  { %v2151_v20 = vadd.f32 %v283_v19, %v267_v16 }
 0x1e2   :  { %1752 = vtanh.f32 %v2151_v20  ;;  %v419_v9 = vrot.slane %v2151_v20, 7 }
 0x1e3   :  { %v281_v22 = vpop.permute.xlu1 %280 }
 0x1e4   :  { %v2154_v23 = vadd.f32 %v281_v22, %v266_v21 }
 0x1e6   :  { %1754 = vtanh.f32 %v2154_v23  ;;  %v418_v13 = vrot.slane %v2154_v23, 7 }
 0x1e7   :  { %1756 = vpow2.f32 %v1518_v26 }
 0x1e8   :  { %1758 = vpow2.f32 %v1516_v27 }
 0x1ec   :  { %v1753_v24 = vpop.eup %1752 }
 0x1ed   :  { %294 = vrot.lane.b32.xlu0 %v1753_v24, %s1958_s24 }
 0x1f0   :  { %v1755_v25 = vpop.eup %1754 }
 0x1f1   :  { %292 = vrot.lane.b32.xlu1 %v1755_v25, %s1958_s24  ;;  %v1757_v28 = vpop.eup %1756 }
 0x1f2   :  { %v255_v29 = vadd.f32 1.0, %v1757_v28  ;;  %v1759_v31 = vpop.eup %1758 }
 0x1f3   :  { %v253_v32 = vadd.f32 1.0, %v1759_v31 }
 0x1f4   :  { %1760 = vrcp.f32 %v255_v29 }
 0x1f5   :  { %1762 = vrcp.f32 %v253_v32 }
 0x1fe   :  { %v1761_v34 = vpop.eup %1760 }
 0x1ff   :  { %v1763_v39 = vpop.eup %1762 }
 0x25f   :  { %v295_v36 = vpop.permute.xlu0 %294 }
 0x260   :  { %v299_v37 = vmul.f32 %v1761_v34, %v295_v36 }
 0x262   :  { %v302_v41 = vrot.slane %v299_v37, 7 }
 0x263   :  { %v293_v40 = vpop.permute.xlu1 %292 }
 0x264   :  { %v298_v42 = vmul.f32 %v1763_v39, %v293_v40 }
 0x266   :  { %v304_v43 = vsel %vm303_vm4, %v302_v41, %v298_v42 }
 0x267   :  { %1519 = vmatmul.mubr.msk.f32.vlgmr.msra.gmra.mrb[4].mxu0 %vm153_vm5, %v304_v43 }
 0x268   :  { %1645 = vmatpush1.bf16.msra.mxu0 %v2019_v8  ;;  %684 = vmatprep.mubr.f32.mxu0 %v1956_v7 }
 0x269   :  { %1647 = vmatprep.subr.bf16.mxu0 %v2041_v17 }
 0x26c   :  { %1649 = vmatpush1.bf16.msra.mxu0 %v2043_v18 }
 0x26d   :  { %1651 = vmatprep.subr.bf16.mxu0 %v2077_v30 }
 0x270   :  { %1653 = vmatpush1.bf16.msra.mxu0 %v2086_v33 }
 0x271   :  { %1655 = vmatprep.subr.bf16.mxu0 %v2094_v35 }
 0x274   :  { %1657 = vmatpush1.bf16.msra.mxu0 %v2104_v38 }
 0x275   :  { %1675 = vmatprep.subr.bf16.mxu0 %v2006_v3 }
 0x33a   :  { %v373_v44 = vpop.f32.mrb[4].mxu0 }
 0x33b   :  { %v375_v45 = vpop.f32.mrb[5].mxu0  ;;  %v388_v52 = vadd.f32 %v373_v44, %v2143_v60  ;;  %v380_v53 = vrot.slane %v373_v44, 7 }
 0x33c   :  { %v381_v46 = vrot.slane %v375_v45, 7  ;;  %v389_v47 = vadd.f32 %v375_v45, %v2135_v50 }
 0x33d   :  { %v1522_v55 = vmul.f32 -1.442695, %v388_v52  ;;  %v386_v56 = vadd.f32 %v380_v53, %v2146_v63 }
 0x33e   :  { %1764 = vtanh.f32 %v389_v47  ;;  %v387_v48 = vadd.f32 %v381_v46, %v2138_v54  ;;  %v1523_v22 = vmul.f32 -1.442695, %v389_v47 }
 0x33f   :  { %v1520_v57 = vmul.f32 -1.442695, %v386_v56 }
 0x340   :  { %1766 = vtanh.f32 %v387_v48  ;;  %v1521_v20 = vmul.f32 -1.442695, %v387_v48 }
 0x341   :  { %1768 = vpow2.f32 %v1522_v55 }
 0x342   :  { %1770 = vpow2.f32 %v1520_v57 }
 0x348   :  { %v1765_v49 = vpop.eup %1764 }
 0x349   :  { %428 = vrot.lane.b32.xlu1 %v1765_v49, %s1958_s24 }
 0x34a   :  { %v1767_v51 = vpop.eup %1766 }
 0x34b   :  { %426 = vrot.lane.b32.xlu0 %v1767_v51, %s1958_s24  ;;  %v1769_v58 = vpop.eup %1768 }
 0x34c   :  { %v404_v59 = vadd.f32 1.0, %v1769_v58  ;;  %v1771_v61 = vpop.eup %1770 }
 0x34d   :  { %v402_v62 = vadd.f32 1.0, %v1771_v61 }
 0x34e   :  { %1772 = vrcp.f32 %v404_v59 }
 0x34f   :  { %1774 = vrcp.f32 %v402_v62 }
 0x358   :  { %v1773_v0 = vpop.eup %1772 }
 0x359   :  { %v1775_v4 = vpop.eup %1774  ;;  %v423_v10 = vmul.f32 %v1773_v0, %v419_v9 }
 0x35a   :  { %v422_v14 = vmul.f32 %v1775_v4, %v418_v13 }
 0x3bb   :  { %v429_v1 = vpop.permute.xlu1 %428 }
 0x3bc   :  { %v433_v2 = vmul.f32 %v1773_v0, %v429_v1 }
 0x3bd   :  { %v427_v5 = vpop.permute.xlu0 %426 }
 0x3be   :  { %438 = vrot.lane.b32.xlu1 %v433_v2, %s1958_s24  ;;  %v432_v6 = vmul.f32 %v1775_v4, %v427_v5 }
 0x3c0   :  { %436 = vrot.lane.b32.xlu0 %v432_v6, %s1958_s24 }
 0x430   :  { %v439_v11 = vpop.permute.xlu1 %438 }
 0x431   :  { %v2179_v12 = vadd.f32 %v439_v11, %v423_v10 }
 0x432   :  { %v437_v15 = vpop.permute.xlu0 %436 }
 0x433   :  { %1776 = vtanh.f32 %v2179_v12  ;;  %v2183_v16 = vadd.f32 %v437_v15, %v422_v14  ;;  %v576_v10 = vrot.slane %v2179_v12, 7 }
 0x435   :  { %1778 = vtanh.f32 %v2183_v16  ;;  %v575_v4 = vrot.slane %v2183_v16, 7 }
 0x436   :  { %1780 = vpow2.f32 %v1521_v20 }
 0x437   :  { %1782 = vpow2.f32 %v1523_v22 }
 0x43d   :  { %v1777_v19 = vpop.eup %1776 }
 0x43e   :  { %450 = vrot.lane.b32.xlu1 %v1777_v19, %s1958_s24 }
 0x43f   :  { %v1779_v21 = vpop.eup %1778 }
 0x440   :  { %448 = vrot.lane.b32.xlu0 %v1779_v21, %s1958_s24  ;;  %v1781_v24 = vpop.eup %1780 }
 0x441   :  { %v1783_v23 = vpop.eup %1782  ;;  %v403_v25 = vadd.f32 1.0, %v1781_v24 }
 0x442   :  { %v405_v26 = vadd.f32 1.0, %v1783_v23 }
 0x443   :  { %1784 = vrcp.f32 %v403_v25 }
 0x444   :  { %1786 = vrcp.f32 %v405_v26 }
 0x44d   :  { %v1785_v27 = vpop.eup %1784 }
 0x44e   :  { %v1787_v32 = vpop.eup %1786 }
 0x4b0   :  { %v451_v28 = vpop.permute.xlu1 %450 }
 0x4b1   :  { %v455_v34 = vmul.f32 %v1787_v32, %v451_v28 }
 0x4b2   :  { %v449_v29 = vpop.permute.xlu0 %448 }
 0x4b3   :  { %v454_v31 = vmul.f32 %v1785_v27, %v449_v29 }
 0x4b5   :  { %v458_v36 = vrot.slane %v454_v31, 1 }
 0x4b7   :  { %v459_v37 = vsel %vm303_vm4, %v455_v34, %v458_v36 }
 0x4b8   :  { %1524 = vmatmul.mubr.msk.f32.vlgmr.msra.gmra.mrb[2].mxu1 %vm153_vm5, %v459_v37 }
 0x4b9   :  { %1661 = vmatpush1.bf16.msra.mxu1 %v2019_v8  ;;  %842 = vmatprep.mubr.f32.mxu1 %v1956_v7 }
 0x4ba   :  { %1663 = vmatprep.subr.bf16.mxu1 %v2041_v17 }
 0x4bd   :  { %1665 = vmatpush1.bf16.msra.mxu1 %v2043_v18 }
 0x4be   :  { %1667 = vmatprep.subr.bf16.mxu1 %v2077_v30 }
 0x4c1   :  { %1669 = vmatpush1.bf16.msra.mxu1 %v2086_v33 }
 0x4c2   :  { %1671 = vmatprep.subr.bf16.mxu1 %v2094_v35 }
 0x4c5   :  { %1673 = vmatpush1.bf16.msra.mxu1 %v2104_v38 }
 0x4c6   :  { %1691 = vmatprep.subr.bf16.mxu1 %v2006_v3 }
 0x58b   :  { %v528_v39 = vpop.f32.mrb[2].mxu1 }
 0x58c   :  { %v530_v40 = vpop.f32.mrb[3].mxu1  ;;  %v535_v47 = vrot.slane %v528_v39, 6  ;;  %v537_v49 = vrot.slane %v528_v39, 7 }
 0x58d   :  { %v536_v41 = vrot.slane %v530_v40, 6  ;;  %v538_v42 = vrot.slane %v530_v40, 7 }
 0x58e   :  { %v543_v48 = vadd.f32 %v535_v47, %v2146_v63  ;;  %v545_v52 = vadd.f32 %v537_v49, %v2143_v60 }
 0x58f   :  { %v544_v43 = vadd.f32 %v536_v41, %v2138_v54  ;;  %v546_v44 = vadd.f32 %v538_v42, %v2135_v50 }
 0x590   :  { %v1525_v51 = vmul.f32 -1.442695, %v543_v48  ;;  %v1527_v53 = vmul.f32 -1.442695, %v545_v52 }
 0x591   :  { %1788 = vtanh.f32 %v544_v43  ;;  %v1526_v16 = vmul.f32 -1.442695, %v544_v43  ;;  %v1528_v21 = vmul.f32 -1.442695, %v546_v44 }
 0x592   :  { %1790 = vtanh.f32 %v546_v44 }
 0x593   :  { %1792 = vpow2.f32 %v1525_v51 }
 0x594   :  { %1794 = vpow2.f32 %v1527_v53 }
 0x59b   :  { %v1789_v45 = vpop.eup %1788 }
 0x59c   :  { %583 = vrot.lane.b32.xlu0 %v1789_v45, %s1958_s24  ;;  %v1791_v46 = vpop.eup %1790 }
 0x59d   :  { %585 = vrot.lane.b32.xlu1 %v1791_v46, %s1958_s24  ;;  %v1793_v55 = vpop.eup %1792 }
 0x59e   :  { %v559_v56 = vadd.f32 1.0, %v1793_v55  ;;  %v1795_v57 = vpop.eup %1794 }
 0x59f   :  { %v561_v58 = vadd.f32 1.0, %v1795_v57 }
 0x5a0   :  { %1796 = vrcp.f32 %v559_v56 }
 0x5a1   :  { %1798 = vrcp.f32 %v561_v58 }
 0x5aa   :  { %v1797_v59 = vpop.eup %1796 }
 0x5ab   :  { %v1799_v0 = vpop.eup %1798  ;;  %v579_v5 = vmul.f32 %v1797_v59, %v575_v4 }
 0x5ac   :  { %v580_v11 = vmul.f32 %v1799_v0, %v576_v10 }
 0x60e   :  { %v584_v61 = vpop.permute.xlu0 %583 }
 0x60f   :  { %v589_v62 = vmul.f32 %v1797_v59, %v584_v61  ;;  %v586_v1 = vpop.permute.xlu1 %585 }
 0x610   :  { %v590_v2 = vmul.f32 %v1799_v0, %v586_v1 }
 0x611   :  { %593 = vrot.lane.b32.xlu0 %v589_v62, %s1958_s24 }
 0x612   :  { %595 = vrot.lane.b32.xlu1 %v590_v2, %s1958_s24 }
 0x683   :  { %v594_v6 = vpop.permute.xlu0 %593 }
 0x684   :  { %v2208_v9 = vadd.f32 %v594_v6, %v579_v5  ;;  %v596_v13 = vpop.permute.xlu1 %595 }
 0x685   :  { %v2212_v14 = vadd.f32 %v596_v13, %v580_v11 }
 0x686   :  { %1800 = vtanh.f32 %v2208_v9  ;;  %v733_v0 = vrot.slane %v2208_v9, 7 }
 0x687   :  { %1802 = vtanh.f32 %v2212_v14  ;;  %v734_v5 = vrot.slane %v2212_v14, 7 }
 0x688   :  { %1804 = vpow2.f32 %v1526_v16 }
 0x689   :  { %1806 = vpow2.f32 %v1528_v21 }
 0x690   :  { %v1801_v15 = vpop.eup %1800 }
 0x691   :  { %605 = vrot.lane.b32.xlu0 %v1801_v15, %s1958_s24  ;;  %v1803_v19 = vpop.eup %1802 }
 0x692   :  { %607 = vrot.lane.b32.xlu1 %v1803_v19, %s1958_s24  ;;  %v1805_v20 = vpop.eup %1804 }
 0x693   :  { %v560_v12 = vadd.f32 1.0, %v1805_v20  ;;  %v1807_v22 = vpop.eup %1806 }
 0x694   :  { %v562_v24 = vadd.f32 1.0, %v1807_v22 }
 0x695   :  { %1808 = vrcp.f32 %v560_v12 }
 0x696   :  { %1810 = vrcp.f32 %v562_v24 }
 0x69f   :  { %v1809_v25 = vpop.eup %1808 }
 0x6a0   :  { %v1811_v27 = vpop.eup %1810 }
 0x703   :  { %v606_v23 = vpop.permute.xlu0 %605 }
 0x704   :  { %v611_v26 = vmul.f32 %v1809_v25, %v606_v23  ;;  %v608_v28 = vpop.permute.xlu1 %607 }
 0x705   :  { %v612_v29 = vmul.f32 %v1811_v27, %v608_v28 }
 0x706   :  { %v615_v31 = vrot.slane %v611_v26, 2 }
 0x707   :  { %v616_v32 = vrot.slane %v612_v29, 1 }
 0x709   :  { %v617_v34 = vsel %vm303_vm4, %v616_v32, %v615_v31 }
 0x70a   :  { %1529 = vmatmul.mubr.msk.f32.vlgmr.msra.gmra.mrb[6].mxu0 %vm153_vm5, %v617_v34 }
 0x70b   :  { %1677 = vmatpush1.bf16.msra.mxu0 %v2019_v8  ;;  %1000 = vmatprep.mubr.f32.mxu0 %v1956_v7 }
 0x70c   :  { %1679 = vmatprep.subr.bf16.mxu0 %v2041_v17 }
 0x70f   :  { %1681 = vmatpush1.bf16.msra.mxu0 %v2043_v18 }
 0x710   :  { %1683 = vmatprep.subr.bf16.mxu0 %v2077_v30 }
 0x713   :  { %1685 = vmatpush1.bf16.msra.mxu0 %v2086_v33 }
 0x714   :  { %1687 = vmatprep.subr.bf16.mxu0 %v2094_v35 }
 0x717   :  { %1689 = vmatpush1.bf16.msra.mxu0 %v2104_v38 }
 0x718   :  { %1707 = vmatprep.subr.bf16.mxu0 %v2006_v3 }
 0x7dd   :  { %v686_v36 = vpop.f32.mrb[6].mxu0 }
 0x7de   :  { %v688_v37 = vpop.f32.mrb[7].mxu0  ;;  %v693_v45 = vrot.slane %v686_v36, 5  ;;  %v695_v3 = vrot.slane %v686_v36, 6 }
 0x7df   :  { %v694_v39 = vrot.slane %v688_v37, 5  ;;  %v696_v40 = vrot.slane %v688_v37, 6 }
 0x7e0   :  { %v701_v46 = vadd.f32 %v693_v45, %v2146_v63  ;;  %v703_v48 = vadd.f32 %v695_v3, %v2143_v60 }
 0x7e1   :  { %v702_v41 = vadd.f32 %v694_v39, %v2138_v54  ;;  %v704_v42 = vadd.f32 %v696_v40, %v2135_v50 }
 0x7e2   :  { %v1530_v47 = vmul.f32 -1.442695, %v701_v46  ;;  %v1532_v49 = vmul.f32 -1.442695, %v703_v48 }
 0x7e3   :  { %1812 = vtanh.f32 %v702_v41  ;;  %v1531_v9 = vmul.f32 -1.442695, %v702_v41  ;;  %v1533_v19 = vmul.f32 -1.442695, %v704_v42 }
 0x7e4   :  { %1814 = vtanh.f32 %v704_v42 }
 0x7e5   :  { %1816 = vpow2.f32 %v1530_v47 }
 0x7e6   :  { %1818 = vpow2.f32 %v1532_v49 }
 0x7ed   :  { %v1813_v43 = vpop.eup %1812 }
 0x7ee   :  { %741 = vrot.lane.b32.xlu0 %v1813_v43, %s1958_s24  ;;  %v1815_v44 = vpop.eup %1814 }
 0x7ef   :  { %743 = vrot.lane.b32.xlu1 %v1815_v44, %s1958_s24  ;;  %v1817_v51 = vpop.eup %1816 }
 0x7f0   :  { %v717_v52 = vadd.f32 1.0, %v1817_v51  ;;  %v1819_v53 = vpop.eup %1818 }
 0x7f1   :  { %v719_v55 = vadd.f32 1.0, %v1819_v53 }
 0x7f2   :  { %1820 = vrcp.f32 %v717_v52 }
 0x7f3   :  { %1822 = vrcp.f32 %v719_v55 }
 0x7fc   :  { %v1821_v56 = vpop.eup %1820 }
 0x7fd   :  { %v1823_v59 = vpop.eup %1822  ;;  %v737_v1 = vmul.f32 %v1821_v56, %v733_v0 }
 0x7fe   :  { %v738_v6 = vmul.f32 %v1823_v59, %v734_v5 }
 0x860   :  { %v742_v57 = vpop.permute.xlu0 %741 }
 0x861   :  { %v747_v58 = vmul.f32 %v1821_v56, %v742_v57  ;;  %v744_v61 = vpop.permute.xlu1 %743 }
 0x862   :  { %v748_v62 = vmul.f32 %v1823_v59, %v744_v61 }
 0x863   :  { %751 = vrot.lane.b32.xlu0 %v747_v58, %s1958_s24 }
 0x864   :  { %753 = vrot.lane.b32.xlu1 %v748_v62, %s1958_s24 }
 0x8d5   :  { %v752_v2 = vpop.permute.xlu0 %751 }
 0x8d6   :  { %v2237_v4 = vadd.f32 %v752_v2, %v737_v1  ;;  %v754_v10 = vpop.permute.xlu1 %753 }
 0x8d7   :  { %v2241_v11 = vadd.f32 %v754_v10, %v738_v6 }
 0x8d8   :  { %1824 = vtanh.f32 %v2237_v4  ;;  %v891_v59 = vrot.slane %v2237_v4, 7 }
 0x8d9   :  { %1826 = vtanh.f32 %v2241_v11  ;;  %v892_v1 = vrot.slane %v2241_v11, 7 }
 0x8da   :  { %1828 = vpow2.f32 %v1531_v9 }
 0x8db   :  { %1830 = vpow2.f32 %v1533_v19 }
 0x8e2   :  { %v1825_v13 = vpop.eup %1824 }
 0x8e3   :  { %763 = vrot.lane.b32.xlu0 %v1825_v13, %s1958_s24  ;;  %v1827_v15 = vpop.eup %1826 }
 0x8e4   :  { %765 = vrot.lane.b32.xlu1 %v1827_v15, %s1958_s24  ;;  %v1829_v16 = vpop.eup %1828 }
 0x8e5   :  { %v718_v14 = vadd.f32 1.0, %v1829_v16  ;;  %v1831_v21 = vpop.eup %1830 }
 0x8e6   :  { %v720_v20 = vadd.f32 1.0, %v1831_v21 }
 0x8e7   :  { %1832 = vrcp.f32 %v718_v14 }
 0x8e8   :  { %1834 = vrcp.f32 %v720_v20 }
 0x8f1   :  { %v1833_v22 = vpop.eup %1832 }
 0x8f2   :  { %v1835_v23 = vpop.eup %1834 }
 0x955   :  { %v764_v12 = vpop.permute.xlu0 %763 }
 0x956   :  { %v769_v24 = vmul.f32 %v1833_v22, %v764_v12  ;;  %v766_v25 = vpop.permute.xlu1 %765 }
 0x957   :  { %v770_v26 = vmul.f32 %v1835_v23, %v766_v25 }
 0x958   :  { %v773_v27 = vrot.slane %v769_v24, 3 }
 0x959   :  { %v774_v28 = vrot.slane %v770_v26, 2 }
 0x95b   :  { %v775_v29 = vsel %vm303_vm4, %v774_v28, %v773_v27 }
 0x95c   :  { %1534 = vmatmul.mubr.msk.f32.vlgmr.msra.gmra.mrb[4].mxu1 %vm153_vm5, %v775_v29 }
 0x95d   :  { %1693 = vmatpush1.bf16.msra.mxu1 %v2019_v8  ;;  %1158 = vmatprep.mubr.f32.mxu1 %v1956_v7 }
 0x95e   :  { %1695 = vmatprep.subr.bf16.mxu1 %v2041_v17 }
 0x961   :  { %1697 = vmatpush1.bf16.msra.mxu1 %v2043_v18 }
 0x962   :  { %1699 = vmatprep.subr.bf16.mxu1 %v2077_v30 }
 0x965   :  { %1701 = vmatpush1.bf16.msra.mxu1 %v2086_v33 }
 0x966   :  { %1703 = vmatprep.subr.bf16.mxu1 %v2094_v35 }
 0x969   :  { %1705 = vmatpush1.bf16.msra.mxu1 %v2104_v38 }
 0xa2f   :  { %v844_v31 = vpop.f32.mrb[4].mxu1 }
 0xa30   :  { %v846_v32 = vpop.f32.mrb[5].mxu1  ;;  %v851_v42 = vrot.slane %v844_v31, 4  ;;  %v853_v44 = vrot.slane %v844_v31, 5 }
 0xa31   :  { %v852_v34 = vrot.slane %v846_v32, 4  ;;  %v854_v36 = vrot.slane %v846_v32, 5 }
 0xa32   :  { %v859_v43 = vadd.f32 %v851_v42, %v2146_v63  ;;  %v861_v46 = vadd.f32 %v853_v44, %v2143_v60 }
 0xa33   :  { %v860_v37 = vadd.f32 %v852_v34, %v2138_v54  ;;  %v862_v39 = vadd.f32 %v854_v36, %v2135_v50 }
 0xa34   :  { %v1535_v45 = vmul.f32 -1.442695, %v859_v43  ;;  %v1537_v3 = vmul.f32 -1.442695, %v861_v46 }
 0xa35   :  { %1836 = vtanh.f32 %v860_v37  ;;  %v1536_v4 = vmul.f32 -1.442695, %v860_v37  ;;  %v1538_v15 = vmul.f32 -1.442695, %v862_v39 }
 0xa36   :  { %1838 = vtanh.f32 %v862_v39 }
 0xa37   :  { %1840 = vpow2.f32 %v1535_v45 }
 0xa38   :  { %1842 = vpow2.f32 %v1537_v3 }
 0xa3f   :  { %v1837_v40 = vpop.eup %1836 }
 0xa40   :  { %899 = vrot.lane.b32.xlu0 %v1837_v40, %s1958_s24  ;;  %v1839_v41 = vpop.eup %1838 }
 0xa41   :  { %901 = vrot.lane.b32.xlu1 %v1839_v41, %s1958_s24  ;;  %v1841_v47 = vpop.eup %1840 }
 0xa42   :  { %v875_v48 = vadd.f32 1.0, %v1841_v47  ;;  %v1843_v49 = vpop.eup %1842 }
 0xa43   :  { %v877_v51 = vadd.f32 1.0, %v1843_v49 }
 0xa44   :  { %1844 = vrcp.f32 %v875_v48 }
 0xa45   :  { %1846 = vrcp.f32 %v877_v51 }
 0xa4e   :  { %v1845_v52 = vpop.eup %1844 }
 0xa4f   :  { %v1847_v56 = vpop.eup %1846  ;;  %v895_v61 = vmul.f32 %v1845_v52, %v891_v59 }
 0xa50   :  { %v896_v2 = vmul.f32 %v1847_v56, %v892_v1 }
 0xab2   :  { %v900_v53 = vpop.permute.xlu0 %899 }
 0xab3   :  { %v905_v55 = vmul.f32 %v1845_v52, %v900_v53  ;;  %v902_v57 = vpop.permute.xlu1 %901 }
 0xab4   :  { %v906_v58 = vmul.f32 %v1847_v56, %v902_v57 }
 0xab5   :  { %909 = vrot.lane.b32.xlu0 %v905_v55, %s1958_s24 }
 0xab6   :  { %911 = vrot.lane.b32.xlu1 %v906_v58, %s1958_s24 }
 0xb27   :  { %v910_v62 = vpop.permute.xlu0 %909 }
 0xb28   :  { %v2265_v0 = vadd.f32 %v910_v62, %v895_v61  ;;  %v912_v5 = vpop.permute.xlu1 %911 }
 0xb29   :  { %v2269_v6 = vadd.f32 %v912_v5, %v896_v2 }
 0xb2a   :  { %1848 = vtanh.f32 %v2265_v0  ;;  %v1049_v47 = vrot.slane %v2265_v0, 7 }
 0xb2b   :  { %1850 = vtanh.f32 %v2269_v6  ;;  %v1050_v52 = vrot.slane %v2269_v6, 7 }
 0xb2c   :  { %1852 = vpow2.f32 %v1536_v4 }
 0xb2d   :  { %1854 = vpow2.f32 %v1538_v15 }
 0xb34   :  { %v1849_v10 = vpop.eup %1848 }
 0xb35   :  { %921 = vrot.lane.b32.xlu0 %v1849_v10, %s1958_s24  ;;  %v1851_v13 = vpop.eup %1850 }
 0xb36   :  { %923 = vrot.lane.b32.xlu1 %v1851_v13, %s1958_s24  ;;  %v1853_v9 = vpop.eup %1852 }
 0xb37   :  { %v876_v11 = vadd.f32 1.0, %v1853_v9  ;;  %v1855_v19 = vpop.eup %1854 }
 0xb38   :  { %v878_v16 = vadd.f32 1.0, %v1855_v19 }
 0xb39   :  { %1856 = vrcp.f32 %v876_v11 }
 0xb3a   :  { %1858 = vrcp.f32 %v878_v16 }
 0xb43   :  { %v1857_v21 = vpop.eup %1856 }
 0xb44   :  { %v1859_v12 = vpop.eup %1858 }
 0xba7   :  { %v922_v14 = vpop.permute.xlu0 %921 }
 0xba8   :  { %v927_v20 = vmul.f32 %v1857_v21, %v922_v14  ;;  %v924_v22 = vpop.permute.xlu1 %923 }
 0xba9   :  { %v928_v24 = vmul.f32 %v1859_v12, %v924_v22 }
 0xbaa   :  { %v931_v23 = vrot.slane %v927_v20, 4 }
 0xbab   :  { %v932_v25 = vrot.slane %v928_v24, 3 }
 0xbad   :  { %v933_v26 = vsel %vm303_vm4, %v932_v25, %v931_v23 }
 0xbae   :  { %1539 = vmatmul.mubr.msk.f32.vlgmr.msra.gmra.mrb[8].mxu0 %vm153_vm5, %v933_v26 }
 0xbaf   :  { %1709 = vmatpush1.bf16.msra.mxu0 %v2019_v8  ;;  %1316 = vmatprep.mubr.f32.mxu0 %v1956_v7 }
 0xbb0   :  { %1711 = vmatprep.subr.bf16.mxu0 %v2041_v17 }
 0xbb3   :  { %1713 = vmatpush1.bf16.msra.mxu0 %v2043_v18 }
 0xbb4   :  { %1715 = vmatprep.subr.bf16.mxu0 %v2077_v30 }
 0xbb7   :  { %1717 = vmatpush1.bf16.msra.mxu0 %v2086_v33 }
 0xbb8   :  { %1719 = vmatprep.subr.bf16.mxu0 %v2094_v35 }
 0xbbb   :  { %1721 = vmatpush1.bf16.msra.mxu0 %v2104_v38 }
 0xc81   :  { %v1002_v27 = vpop.f32.mrb[8].mxu0 }
 0xc82   :  { %v1004_v28 = vpop.f32.mrb[9].mxu0  ;;  %v1009_v30 = vrot.slane %v1002_v27, 3  ;;  %v1011_v35 = vrot.slane %v1002_v27, 4 }
 0xc83   :  { %v1010_v29 = vrot.slane %v1004_v28, 3  ;;  %v1012_v31 = vrot.slane %v1004_v28, 4 }
 0xc84   :  { %v1017_v33 = vadd.f32 %v1009_v30, %v2146_v63  ;;  %v1019_v34 = vadd.f32 %v1011_v35, %v2143_v60 }
 0xc85   :  { %v1018_v8 = vadd.f32 %v1010_v29, %v2138_v54  ;;  %v1020_v32 = vadd.f32 %v1012_v31, %v2135_v50 }
 0xc86   :  { %v1540_v38 = vmul.f32 -1.442695, %v1017_v33  ;;  %v1542_v36 = vmul.f32 -1.442695, %v1019_v34 }
 0xc87   :  { %1860 = vtanh.f32 %v1018_v8  ;;  %v1541_v59 = vmul.f32 -1.442695, %v1018_v8  ;;  %v1543_v61 = vmul.f32 -1.442695, %v1020_v32 }
 0xc88   :  { %1862 = vtanh.f32 %v1020_v32 }
 0xc89   :  { %1864 = vpow2.f32 %v1540_v38 }
 0xc8a   :  { %1866 = vpow2.f32 %v1542_v36 }
 0xc91   :  { %v1861_v17 = vpop.eup %1860 }
 0xc92   :  { %1057 = vrot.lane.b32.xlu0 %v1861_v17, %s1958_s24  ;;  %v1863_v18 = vpop.eup %1862 }
 0xc93   :  { %1059 = vrot.lane.b32.xlu1 %v1863_v18, %s1958_s24  ;;  %v1865_v37 = vpop.eup %1864 }
 0xc94   :  { %v1033_v39 = vadd.f32 1.0, %v1865_v37  ;;  %v1867_v40 = vpop.eup %1866 }
 0xc95   :  { %v1035_v41 = vadd.f32 1.0, %v1867_v40 }
 0xc96   :  { %1868 = vrcp.f32 %v1033_v39 }
 0xc97   :  { %1870 = vrcp.f32 %v1035_v41 }
 0xca0   :  { %v1869_v42 = vpop.eup %1868 }
 0xca1   :  { %v1871_v45 = vpop.eup %1870  ;;  %v1053_v48 = vmul.f32 %v1869_v42, %v1049_v47 }
 0xca2   :  { %v1054_v53 = vmul.f32 %v1871_v45, %v1050_v52 }
 0xd04   :  { %v1058_v43 = vpop.permute.xlu0 %1057 }
 0xd05   :  { %v1063_v44 = vmul.f32 %v1869_v42, %v1058_v43  ;;  %v1060_v46 = vpop.permute.xlu1 %1059 }
 0xd06   :  { %v1064_v3 = vmul.f32 %v1871_v45, %v1060_v46 }
 0xd07   :  { %1067 = vrot.lane.b32.xlu0 %v1063_v44, %s1958_s24 }
 0xd08   :  { %1069 = vrot.lane.b32.xlu1 %v1064_v3, %s1958_s24 }
 0xd79   :  { %v1068_v49 = vpop.permute.xlu0 %1067 }
 0xd7a   :  { %v2293_v51 = vadd.f32 %v1068_v49, %v1053_v48  ;;  %v1070_v55 = vpop.permute.xlu1 %1069 }
 0xd7b   :  { %v2297_v56 = vadd.f32 %v1070_v55, %v1054_v53 }
 0xd7c   :  { %1872 = vtanh.f32 %v2293_v51  ;;  %v1207_v37 = vrot.slane %v2293_v51, 7 }
 0xd7d   :  { %1874 = vtanh.f32 %v2297_v56  ;;  %v1208_v42 = vrot.slane %v2297_v56, 7 }
 0xd7e   :  { %1876 = vpow2.f32 %v1541_v59 }
 0xd7f   :  { %1878 = vpow2.f32 %v1543_v61 }
 0xd86   :  { %v1873_v57 = vpop.eup %1872 }
 0xd87   :  { %1079 = vrot.lane.b32.xlu0 %v1873_v57, %s1958_s24  ;;  %v1875_v58 = vpop.eup %1874 }
 0xd88   :  { %1081 = vrot.lane.b32.xlu1 %v1875_v58, %s1958_s24  ;;  %v1877_v62 = vpop.eup %1876 }
 0xd89   :  { %v1034_v0 = vadd.f32 1.0, %v1877_v62  ;;  %v1879_v1 = vpop.eup %1878 }
 0xd8a   :  { %v1036_v2 = vadd.f32 1.0, %v1879_v1 }
 0xd8b   :  { %1880 = vrcp.f32 %v1034_v0 }
 0xd8c   :  { %1882 = vrcp.f32 %v1036_v2 }
 0xd95   :  { %v1881_v6 = vpop.eup %1880 }
 0xd96   :  { %v1883_v13 = vpop.eup %1882 }
 0xdf9   :  { %v1080_v5 = vpop.permute.xlu0 %1079 }
 0xdfa   :  { %v1085_v10 = vmul.f32 %v1881_v6, %v1080_v5  ;;  %v1082_v4 = vpop.permute.xlu1 %1081 }
 0xdfb   :  { %v1086_v15 = vmul.f32 %v1883_v13, %v1082_v4 }
 0xdfc   :  { %v1089_v9 = vrot.slane %v1085_v10, 5 }
 0xdfd   :  { %v1090_v11 = vrot.slane %v1086_v15, 4 }
 0xdff   :  { %v1091_v19 = vsel %vm303_vm4, %v1090_v11, %v1089_v9 }
 0xe00   :  { %1544 = vmatmul.mubr.msk.f32.vlgmr.msra.gmra.mrb[6].mxu1 %vm153_vm5, %v1091_v19 }
 0xe01   :  { %1581 = vmatprep.mubr.msk.f32.mxu1 %vm1960_vm6, %v1956_v7 }
 0xed3   :  { %v1160_v16 = vpop.f32.mrb[6].mxu1 }
 0xed4   :  { %v1162_v14 = vpop.f32.mrb[7].mxu1  ;;  %v1167_v25 = vrot.slane %v1160_v16, 2  ;;  %v1169_v27 = vrot.slane %v1160_v16, 3 }
 0xed5   :  { %v1168_v21 = vrot.slane %v1162_v14, 2  ;;  %v1170_v20 = vrot.slane %v1162_v14, 3 }
 0xed6   :  { %v1175_v26 = vadd.f32 %v1167_v25, %v2146_v63  ;;  %v1177_v29 = vadd.f32 %v1169_v27, %v2143_v60 }
 0xed7   :  { %v1176_v12 = vadd.f32 %v1168_v21, %v2138_v54  ;;  %v1178_v22 = vadd.f32 %v1170_v20, %v2135_v50 }
 0xed8   :  { %v1545_v28 = vmul.f32 -1.442695, %v1175_v26  ;;  %v1547_v31 = vmul.f32 -1.442695, %v1177_v29  ;;  %v1405_v29 = vld [vmem:[%s2390_s4 + $0x10] sm:$0xff] }
 0xed9   :  { %1884 = vtanh.f32 %v1176_v12  ;;  %v1546_v47 = vmul.f32 -1.442695, %v1176_v12  ;;  %v1548_v48 = vmul.f32 -1.442695, %v1178_v22 }
 0xeda   :  { %1886 = vtanh.f32 %v1178_v22 }
 0xedb   :  { %1888 = vpow2.f32 %v1545_v28  ;;  %v1404_v28 = vld [vmem:[%s2390_s4 + $0x8] sm:$0xff] }
 0xedc   :  { %1890 = vpow2.f32 %v1547_v31  ;;  %v1959_v31 = vmov 0.0|0.0  }
 0xedd   :  { %1722 = vmatprep.subr.bf16.mxu1 %v1959_v31 }
 0xee3   :  { %v1885_v24 = vpop.eup %1884 }
 0xee4   :  { %1215 = vrot.lane.b32.xlu0 %v1885_v24, %s1958_s24  ;;  %v1887_v23 = vpop.eup %1886 }
 0xee5   :  { %1217 = vrot.lane.b32.xlu1 %v1887_v23, %s1958_s24  ;;  %v1889_v8 = vpop.eup %1888 }
 0xee6   :  { %v1191_v32 = vadd.f32 1.0, %v1889_v8  ;;  %v1891_v17 = vpop.eup %1890 }
 0xee7   :  { %v1193_v18 = vadd.f32 1.0, %v1891_v17 }
 0xee8   :  { %1892 = vrcp.f32 %v1191_v32  ;;  %v1406_v32 = vld [vmem:[%s2390_s4 + $0x18] sm:$0xff] }
 0xee9   :  { %1894 = vrcp.f32 %v1193_v18  ;;  %v1726_v17 = vpack.c.bf16 %v1406_v32, %v1405_v29  ;;  %v1407_v18 = vld [vmem:[%s2390_s4 + $0x20] sm:$0xff] }
 0xef2   :  { %v1893_v30 = vpop.eup %1892 }
 0xef3   :  { %v1895_v38 = vpop.eup %1894  ;;  %v1211_v39 = vmul.f32 %v1893_v30, %v1207_v37 }
 0xef4   :  { %v1212_v43 = vmul.f32 %v1895_v38, %v1208_v42  ;;  %v1409_v42 = vld [vmem:[%s2390_s4 + $0x30] sm:$0xff] }
 0xf56   :  { %v1216_v33 = vpop.permute.xlu0 %1215 }
 0xf57   :  { %v1221_v35 = vmul.f32 %v1893_v30, %v1216_v33  ;;  %v1218_v34 = vpop.permute.xlu1 %1217  ;;  %v1408_v30 = vld [vmem:[%s2390_s4 + $0x28] sm:$0xff] }
 0xf58   :  { %v1222_v36 = vmul.f32 %v1895_v38, %v1218_v34  ;;  %v1729_v33 = vpack.c.bf16 %v1408_v30, %v1407_v18 }
 0xf59   :  { %1225 = vrot.lane.b32.xlu0 %v1221_v35, %s1958_s24 }
 0xf5a   :  { %1227 = vrot.lane.b32.xlu1 %v1222_v36, %s1958_s24 }
 0xfcb   :  { %v1226_v40 = vpop.permute.xlu0 %1225 }
 0xfcc   :  { %v2313_v41 = vadd.f32 %v1226_v40, %v1211_v39  ;;  %v1228_v44 = vpop.permute.xlu1 %1227 }
 0xfcd   :  { %v2317_v45 = vadd.f32 %v1228_v44, %v1212_v43  ;;  %v1410_v43 = vld [vmem:[%s2390_s4 + $0x38] sm:$0xff] }
 0xfce   :  { %1896 = vtanh.f32 %v2313_v41  ;;  %v1365_v35 = vrot.slane %v2313_v41, 7 }
 0xfcf   :  { %1898 = vtanh.f32 %v2317_v45  ;;  %v1366_v37 = vrot.slane %v2317_v45, 7 }
 0xfd0   :  { %1900 = vpow2.f32 %v1546_v47 }
 0xfd1   :  { %1902 = vpow2.f32 %v1548_v48 }
 0xfd8   :  { %v1897_v46 = vpop.eup %1896 }
 0xfd9   :  { %1237 = vrot.lane.b32.xlu0 %v1897_v46, %s1958_s24  ;;  %v1899_v3 = vpop.eup %1898  ;;  %v1732_v46 = vpack.c.bf16 %v1410_v43, %v1409_v42 }
 0xfda   :  { %1239 = vrot.lane.b32.xlu1 %v1899_v3, %s1958_s24  ;;  %v1901_v49 = vpop.eup %1900 }
 0xfdb   :  { %v1192_v51 = vadd.f32 1.0, %v1901_v49  ;;  %v1903_v52 = vpop.eup %1902 }
 0xfdc   :  { %v1194_v53 = vadd.f32 1.0, %v1903_v52 }
 0xfdd   :  { %1904 = vrcp.f32 %v1192_v51 }
 0xfde   :  { %1906 = vrcp.f32 %v1194_v53 }
 0xfe7   :  { %v1905_v56 = vpop.eup %1904 }
 0xfe8   :  { %v1907_v58 = vpop.eup %1906 }
0x104b   :  { %v1238_v55 = vpop.permute.xlu0 %1237 }
0x104c   :  { %v1243_v57 = vmul.f32 %v1905_v56, %v1238_v55  ;;  %v1240_v59 = vpop.permute.xlu1 %1239 }
0x104d   :  { %v1244_v61 = vmul.f32 %v1907_v58, %v1240_v59 }
0x104e   :  { %v1247_v62 = vrot.slane %v1243_v57, 6 }
0x104f   :  { %v1248_v0 = vrot.slane %v1244_v61, 5 }
0x1051   :  { %v1249_v1 = vsel %vm303_vm4, %v1248_v0, %v1247_v62  ;;  %v1554_v0 = vld [vmem:[%s2391_s5] ss:$0 sm:$0xff] }
0x1052   :  { %1549 = vmatmul.mubr.msk.f32.vlgmr.msra.gmra.mrb[10].mxu0 %vm153_vm5, %v1249_v1 }
0x1125   :  { %v1318_v2 = vpop.f32.mrb[10].mxu0 }
0x1126   :  { %v1320_v5 = vpop.f32.mrb[11].mxu0  ;;  %v1325_v11 = vrot.slane %v1318_v2, 1  ;;  %v1327_v16 = vrot.slane %v1318_v2, 2 }
0x1127   :  { %v1326_v6 = vrot.slane %v1320_v5, 1  ;;  %v1328_v10 = vrot.slane %v1320_v5, 2 }
0x1128   :  { %v1333_v19 = vadd.f32 %v1325_v11, %v2146_v63 }
0x1129   :  { %v2325_v13 = vadd.f32 %v1326_v6, %v2138_v54  ;;  %v2329_v4 = vadd.f32 %v1328_v10, %v2135_v50  ;;  %v1335_v54 = vadd.f32 %v1327_v16, %v2143_v60  ;;  %v1403_v60 = vld [vmem:[%s2390_s4] sm:$0xff] }
0x112a   :  { %v1550_v14 = vmul.f32 -1.442695, %v1333_v19  ;;  %v1723_v8 = vpack.c.bf16 %v1404_v28, %v1403_v60 }
0x112b   :  { %1908 = vtanh.f32 %v2325_v13  ;;  %v1552_v21 = vmul.f32 -1.442695, %v1335_v54  ;;  %v1551_v3 = vmul.f32 -1.442695, %v2325_v13  ;;  %v1553_v47 = vmul.f32 -1.442695, %v2329_v4 }
0x112c   :  { %1910 = vtanh.f32 %v2329_v4  ;;  %1724 = vmatpush3.bf16.msra.mxu1 %v1723_v8 }
0x112d   :  { %1912 = vpow2.f32 %v1550_v14  ;;  %1725 = vmatprep.subr.bf16.mxu1 %v1959_v31 }
0x112e   :  { %1914 = vpow2.f32 %v1552_v21 }
0x1130   :  { %1727 = vmatpush3.bf16.msra.mxu1 %v1726_v17 }
0x1131   :  { %1728 = vmatprep.subr.bf16.mxu1 %v1959_v31 }
0x1134   :  { %1730 = vmatpush3.bf16.msra.mxu1 %v1729_v33 }
0x1135   :  { %v1909_v15 = vpop.eup %1908  ;;  %1731 = vmatprep.subr.bf16.mxu1 %v1959_v31 }
0x1136   :  { %1373 = vrot.lane.b32.xlu0 %v1909_v15, %s1958_s24  ;;  %v1911_v9 = vpop.eup %1910 }
0x1137   :  { %1375 = vrot.lane.b32.xlu1 %v1911_v9, %s1958_s24  ;;  %v1913_v50 = vpop.eup %1912 }
0x1138   :  { %v1349_v20 = vadd.f32 1.0, %v1913_v50  ;;  %v1915_v12 = vpop.eup %1914  ;;  %1733 = vmatpush3.bf16.msra.mxu1 %v1732_v46 }
0x1139   :  { %v1351_v22 = vadd.f32 1.0, %v1915_v12 }
0x113a   :  { %1916 = vrcp.f32 %v1349_v20 }
0x113b   :  { %1918 = vrcp.f32 %v1351_v22 }
0x1144   :  { %v1917_v24 = vpop.eup %1916 }
0x1145   :  { %v1919_v26 = vpop.eup %1918  ;;  %v1369_v38 = vmul.f32 %v1917_v24, %v1365_v35 }
0x1146   :  { %v1370_v39 = vmul.f32 %v1919_v26, %v1366_v37 }
0x11a8   :  { %v1374_v23 = vpop.permute.xlu0 %1373 }
0x11a9   :  { %v1379_v25 = vmul.f32 %v1917_v24, %v1374_v23  ;;  %v1376_v63 = vpop.permute.xlu1 %1375 }
0x11aa   :  { %v1380_v27 = vmul.f32 %v1919_v26, %v1376_v63 }
0x11ab   :  { %1383 = vrot.lane.b32.xlu0 %v1379_v25, %s1958_s24 }
0x11ac   :  { %1385 = vrot.lane.b32.xlu1 %v1380_v27, %s1958_s24 }
0x121d   :  { %v1384_v34 = vpop.permute.xlu0 %1383 }
0x121e   :  { %v1389_v36 = vadd.f32 %v1384_v34, %v1369_v38  ;;  %v1386_v40 = vpop.permute.xlu1 %1385 }
0x121f   :  { %v1390_v44 = vadd.f32 %v1386_v40, %v1370_v39 }
0x1220   :  { %1920 = vtanh.f32 %v1389_v36 }
0x1221   :  { %1922 = vtanh.f32 %v1390_v44 }
0x1222   :  { %1924 = vpow2.f32 %v1551_v3 }
0x1223   :  { %1926 = vpow2.f32 %v1553_v47 }
0x122a   :  { %v1921_v41 = vpop.eup %1920 }
0x122b   :  { %1395 = vrot.lane.b32.xlu0 %v1921_v41, %s1958_s24  ;;  %v1923_v45 = vpop.eup %1922 }
0x122c   :  { %1397 = vrot.lane.b32.xlu1 %v1923_v45, %s1958_s24  ;;  %v1925_v48 = vpop.eup %1924 }
0x122d   :  { %v1350_v49 = vadd.f32 1.0, %v1925_v48  ;;  %v1927_v51 = vpop.eup %1926 }
0x122e   :  { %v1352_v52 = vadd.f32 1.0, %v1927_v51 }
0x122f   :  { %1928 = vrcp.f32 %v1350_v49 }
0x1230   :  { %1930 = vrcp.f32 %v1352_v52 }
0x1239   :  { %v1929_v7 = vpop.eup %1928 }
0x123a   :  { %v1931_v56 = vpop.eup %1930 }
0x129d   :  { %v1396_v53 = vpop.permute.xlu0 %1395 }
0x129e   :  { %v1401_v55 = vmul.f32 %v1929_v7, %v1396_v53  ;;  %v1398_v57 = vpop.permute.xlu1 %1397 }
0x129f   :  { %v1402_v58 = vmul.f32 %v1931_v56, %v1398_v57 }
0x12a0   :  { %v1420_v59 = vrot.slane %v1401_v55, 7 }
0x12a1   :  { %v1421_v61 = vrot.slane %v1402_v58, 6 }
0x12a3   :  { %v1422_v62 = vsel %vm303_vm4, %v1421_v61, %v1420_v59 }
0x12a4   :  { %1582 = vmatmul.mubr.msk.f32.vlgmr.msra.gmra.mrb[8].mxu1 %vm153_vm5, %v1422_v62 }
0x1377   :  { %v1491_v1 = vpop.f32.mrb[8].mxu1 }
0x1378   :  { %v1492_v2 = vadd.f32 %v1554_v0, %v1491_v1  ;;  %v1583_v5 = vpop.f32.mrb[9].mxu1 }
0x137a   :  { %1496 = vst.msk [vmem:[#allocation2] sm:$0x3] %vm1495_vm7, %v1492_v2 }
0x137b   :  { %1943 = shalt.err (!%p1940_p4)
}
0x137c   :  { %s1944_s21 = scalar_lea.hbm %s2392_s6, 32 }
0x137d   :  { %p1945_p5 = scmp.ne.s32.totalorder %s2392_s6, %s1944_s21  ;;  %p1948_p6 = scmp.lt.u32.totalorder %s1944_s21, %s2392_s6 }
0x137f   :  { %p1950_p7 = pnand %p1948_p6, %p1945_p5 }
0x1381   :  { %1953 = shalt.err (!%p1950_p7)
}
0x1382   :  { %1506 = dma.vmem_to_hbm [thread:$0]  %s1504_s17, 32, %s2392_s6, [#allocation3]  }
0x1383   :  { %1954 = dma.done.wait [#allocation3], 32  }
0x1384   :  { %1955 = vsyncadd [#allocation3], 4294967264 }
0x1385   :  { %1510 = vsyncpa [#allocation3], 1 }

</bundles_post_ra>
